<compile_context>
chip_gen: v6e
topology: v6e:2x2x1
jax: 0.10.0
libtpu: 0.0.40
codegen_flags: <defaults>
</compile_context>

<pallas_src>
import functools

import jax
import jax.numpy as jnp
from jax.experimental import pallas as pl
from jax.experimental.pallas import tpu as pltpu


def _cdiv(a, b):
    return -(-a // b)


def _round_up(a, b):
    return _cdiv(a, b) * b


def _focal_tile_kernel(pred_ref, target_ref, out_ref, *, alpha, gamma):
    """One grid step == one lane-dense (row_tile, LANE) tile of the flattened input.

    Emits per-lane partial sums (sublane reduce only); the tiny final
    cross-tile / cross-lane reduction happens in the JAX wrapper.
    """
    p = pred_ref[...].astype(jnp.float32)     # (row_tile, LANE)
    t = target_ref[...].astype(jnp.float32)   # (row_tile, LANE)

    # pred = cat((1 - pred, pred), dim=1); class_mask one-hot from target.
    # (Assumes binary targets; padded elements carry sentinel 2 -> both masks 0.)
    mask0 = (t == 0.0).astype(jnp.float32)
    mask1 = (t == 1.0).astype(jnp.float32)

    # probs = (pred * class_mask).sum(dim=1), clamped.
    probs = (1.0 - p) * mask0 + p * mask1
    probs = jnp.clip(probs, 0.0001, 1.0)
    log_p = jnp.log(probs)

    # alpha = ([1-a, a] * class_mask).sum(dim=1)
    alpha_w = (1.0 - alpha) * mask0 + alpha * mask1

    # (1 - probs) ** gamma : keep integer gamma on the VALU (no EUP pow).
    one_minus = 1.0 - probs
    if isinstance(gamma, int) and gamma >= 0:
        pow_term = jnp.ones_like(one_minus)
        for _ in range(int(gamma)):
            pow_term = pow_term * one_minus
    else:
        pow_term = one_minus ** gamma

    batch_loss = -alpha_w * pow_term * log_p

    # Per-lane partial sums for this tile (lane-dense (1, LANE) store).
    out_ref[...] = jnp.sum(batch_loss, axis=0, keepdims=True)


def focal_loss_multilabel(pred, target, *, alpha=0.25, gamma=2,
                          size_average=True, use_target_onehot=False):
    """JAX/Pallas equivalent of FocalLoss_MultiLabel.forward(pred, target)."""
    assert pred.shape == target.shape
    n_elem = 1
    for d in target.shape:
        n_elem *= int(d)

    if not use_target_onehot:
        # Literal reference semantics: class_mask is never written, so the
        # loss is identically 0.0 -- no need to read any HBM at all.
        return jnp.zeros((), jnp.float32)

    # bool targets can't carry the padding sentinel (2); widen them cheaply.
    if target.dtype == jnp.bool_:
        target = target.astype(jnp.int8)

    # Lane-dense layout: flatten all labels/elements into (rows, LANE).
    LANE = 512 if n_elem >= 512 else 128           # multiple of 128
    rows = _cdiv(n_elem, LANE)
    ROW_TILE = 512                                  # (512, 512) f32 tile ~= 1 MiB/input
    row_tile = min(ROW_TILE, _round_up(rows, 8))    # multiple of 8
    rows_padded = _round_up(rows, row_tile)
    grid = rows_padded // row_tile
    total_padded = rows_padded * LANE

    pred_flat = pred.reshape(-1)
    target_flat = target.reshape(-1)
    pad = total_padded - n_elem
    if pad:
        pred_flat = jnp.pad(pred_flat, (0, pad))
        # sentinel 2: neither class 0 nor 1 -> zero loss contribution.
        target_flat = jnp.pad(target_flat, (0, pad), constant_values=2)
    pred2 = pred_flat.reshape(rows_padded, LANE)      # original dtype, cast in-kernel
    target2 = target_flat.reshape(rows_padded, LANE)  # original dtype, cast in-kernel

    kernel = functools.partial(_focal_tile_kernel, alpha=float(alpha), gamma=gamma)

    partials = pl.pallas_call(
        kernel,
        out_shape=jax.ShapeDtypeStruct((grid, LANE), jnp.float32),
        grid_spec=pltpu.PrefetchScalarGridSpec(
            num_scalar_prefetch=0,
            grid=(grid,),
            in_specs=[
                pl.BlockSpec((row_tile, LANE), lambda i: (i, 0)),  # pred tile
                pl.BlockSpec((row_tile, LANE), lambda i: (i, 0)),  # target tile
            ],
            out_specs=pl.BlockSpec((1, LANE), lambda i: (i, 0)),   # per-tile partials
        ),
        compiler_params=pltpu.CompilerParams(
            dimension_semantics=("parallel",)),  # independent tiles -> megacore on v7x
    )(pred2, target2)

    total = jnp.sum(partials)
    if size_average:
        # inner mean over N per label, outer mean over L labels; all labels
        # share the same N, so this equals the global mean over L*N elements.
        return total / float(n_elem)
    return total


def focal_loss_multilabel_ref(pred, target, alpha=0.25, gamma=2,
                              size_average=True, use_target_onehot=False):
    """Pure-JAX reference mirroring the same semantics (for validation)."""
    L = target.shape[0]
    p = pred.reshape(L, -1).astype(jnp.float32)
    t = target.reshape(L, -1).astype(jnp.float32)
    if use_target_onehot:
        mask0 = (t == 0.0).astype(jnp.float32)
        mask1 = (t == 1.0).astype(jnp.float32)
    else:
        mask0 = jnp.zeros_like(p)
        mask1 = jnp.zeros_like(p)
    probs = jnp.clip((1.0 - p) * mask0 + p * mask1, 0.0001, 1.0)
    log_p = jnp.log(probs)
    alpha_w = (1.0 - alpha) * mask0 + alpha * mask1
    bl = -alpha_w * (1.0 - probs) ** gamma * log_p
    per_label = bl.mean(axis=1) if size_average else bl.sum(axis=1)
    return per_label.mean() if size_average else per_label.sum()


if __name__ == "__main__":
    key = jax.random.PRNGKey(0)
    kp, kt, kp2, kt2 = jax.random.split(key, 4)

    # Small shapes consistent with the module: L=4 labels, each label slice
    # is an (8, 16) map of per-element probabilities / binary targets.
    L, H, W = 4, 8, 16
    pred = jax.random.uniform(kp, (L, H, W), dtype=jnp.float32,
                              minval=0.01, maxval=0.99)
    target = jax.random.bernoulli(kt, p=0.3, shape=(L, H, W)).astype(jnp.float32)

    # 1) Literal reference semantics (class_mask stays zeros -> loss == 0.0).
    loss_literal = jax.block_until_ready(focal_loss_multilabel(pred, target))
    ref_literal = focal_loss_multilabel_ref(pred, target)
    assert jnp.allclose(loss_literal, ref_literal, atol=1e-6), (loss_literal, ref_literal)
    assert float(loss_literal) == 0.0

    # 2) Intended one-hot focal loss (exercises the full elementwise hot path).
    loss_onehot = jax.block_until_ready(
        focal_loss_multilabel(pred, target, use_target_onehot=True))
    ref_onehot = focal_loss_multilabel_ref(pred, target, use_target_onehot=True)
    assert jnp.allclose(loss_onehot, ref_onehot, rtol=1e-5, atol=1e-6), (
        loss_onehot, ref_onehot)

    # 3) Odd sizes (exercise padding path) + size_average=False (sum reduction).
    L2, H2, W2 = 3, 6, 9
    pred_b = jax.random.uniform(kp2, (L2, H2, W2), dtype=jnp.float32,
                                minval=0.01, maxval=0.99)
    target_b = jax.random.bernoulli(kt2, p=0.5, shape=(L2, H2, W2)).astype(jnp.float32)
    loss_b = jax.block_until_ready(
        focal_loss_multilabel(pred_b, target_b, size_average=False,
                              use_target_onehot=True))
    ref_b = focal_loss_multilabel_ref(pred_b, target_b, size_average=False,
                                      use_target_onehot=True)
    assert jnp.allclose(loss_b, ref_b, rtol=1e-5, atol=1e-6), (loss_b, ref_b)

    print("KERNEL_OK")
</pallas_src>

<mosaic_0001>
module attributes {stable_mosaic.version = 11 : i64} {
  func.func @_focal_tile_kernel(%arg0: i32, %arg1: memref<8x512xf32, #tpu.memory_space<vmem>>, %arg2: memref<8x512xf32, #tpu.memory_space<vmem>>, %arg3: memref<1x512xf32, #tpu.memory_space<vmem>>) attributes {dimension_semantics = [#tpu.dimension_semantics<parallel>], iteration_bounds = array<i64: 1>, scalar_prefetch = 0 : i64, scratch_operands = 0 : i64, tpu.core_type = #tpu.core_type<tc>, window_params = [{transform_indices = @transform_0, window_bounds = array<i64: 8, 512>}, {transform_indices = @transform_1, window_bounds = array<i64: 8, 512>}, {transform_indices = @transform_2, window_bounds = array<i64: 1, 512>}]} {
    %c0 = arith.constant 0 : index
    %c0_0 = arith.constant 0 : index
    %0 = vector.load %arg1[%c0, %c0_0] : memref<8x512xf32, #tpu.memory_space<vmem>>, vector<8x512xf32>
    %c0_1 = arith.constant 0 : index
    %c0_2 = arith.constant 0 : index
    %1 = vector.load %arg2[%c0_1, %c0_2] : memref<8x512xf32, #tpu.memory_space<vmem>>, vector<8x512xf32>
    %cst = arith.constant 0.000000e+00 : f32
    %2 = vector.broadcast %cst : f32 to vector<8x512xf32>
    %3 = arith.cmpf oeq, %1, %2 : vector<8x512xf32>
    %4 = arith.extui %3 : vector<8x512xi1> to vector<8x512xi32>
    %5 = arith.sitofp %4 : vector<8x512xi32> to vector<8x512xf32>
    %cst_3 = arith.constant 1.000000e+00 : f32
    %6 = vector.broadcast %cst_3 : f32 to vector<8x512xf32>
    %7 = arith.cmpf oeq, %1, %6 : vector<8x512xf32>
    %8 = arith.extui %7 : vector<8x512xi1> to vector<8x512xi32>
    %9 = arith.sitofp %8 : vector<8x512xi32> to vector<8x512xf32>
    %cst_4 = arith.constant 1.000000e+00 : f32
    %10 = vector.broadcast %cst_4 : f32 to vector<8x512xf32>
    %11 = arith.subf %10, %0 : vector<8x512xf32>
    %12 = arith.mulf %11, %5 : vector<8x512xf32>
    %13 = arith.mulf %0, %9 : vector<8x512xf32>
    %14 = arith.addf %12, %13 : vector<8x512xf32>
    %cst_5 = arith.constant 9.99999974E-5 : f32
    %cst_6 = arith.constant 1.000000e+00 : f32
    %15 = vector.broadcast %cst_5 : f32 to vector<8x512xf32>
    %16 = arith.maximumf %15, %14 : vector<8x512xf32>
    %17 = vector.broadcast %cst_6 : f32 to vector<8x512xf32>
    %18 = arith.minimumf %17, %16 : vector<8x512xf32>
    %19 = math.log %18 : vector<8x512xf32>
    %cst_7 = arith.constant 7.500000e-01 : f32
    %20 = vector.broadcast %cst_7 : f32 to vector<8x512xf32>
    %21 = arith.mulf %20, %5 : vector<8x512xf32>
    %cst_8 = arith.constant 2.500000e-01 : f32
    %22 = vector.broadcast %cst_8 : f32 to vector<8x512xf32>
    %23 = arith.mulf %22, %9 : vector<8x512xf32>
    %24 = arith.addf %21, %23 : vector<8x512xf32>
    %cst_9 = arith.constant 1.000000e+00 : f32
    %25 = vector.broadcast %cst_9 : f32 to vector<8x512xf32>
    %26 = arith.subf %25, %18 : vector<8x512xf32>
    %cst_10 = arith.constant 1.000000e+00 : f32
    %27 = vector.broadcast %cst_10 : f32 to vector<8x512xf32>
    %28 = arith.mulf %27, %26 : vector<8x512xf32>
    %29 = arith.mulf %28, %26 : vector<8x512xf32>
    %cst_11 = arith.constant 0.000000e+00 : f32
    %30 = vector.broadcast %cst_11 : f32 to vector<8x512xf32>
    %31 = arith.subf %30, %24 : vector<8x512xf32>
    %32 = arith.mulf %31, %29 : vector<8x512xf32>
    %33 = arith.mulf %32, %19 : vector<8x512xf32>
    %cst_12 = arith.constant dense<0.000000e+00> : vector<512xf32>
    %34 = vector.multi_reduction <add>, %33, %cst_12 [0] : vector<8x512xf32> to vector<512xf32>
    %35 = vector.shape_cast %34 : vector<512xf32> to vector<1x512xf32>
    %c0_13 = arith.constant 0 : index
    %c0_14 = arith.constant 0 : index
    %36 = vector.load %arg3[%c0_13, %c0_14] : memref<1x512xf32, #tpu.memory_space<vmem>>, vector<1x512xf32>
    tpu.vector_store %arg3[%c0_13, %c0_14], %35 {strides = array<i32>} : memref<1x512xf32, #tpu.memory_space<vmem>>, vector<1x512xf32>,
    return
  }
  func.func @transform_0(%arg0: i32) -> (i32, i32) {
    %c0_i32 = arith.constant 0 : i32
    %c0_i32_0 = arith.constant 0 : i32
    return %arg0, %c0_i32 : i32, i32
  }
  func.func @transform_1(%arg0: i32) -> (i32, i32) {
    %c0_i32 = arith.constant 0 : i32
    %c0_i32_0 = arith.constant 0 : i32
    return %arg0, %c0_i32 : i32, i32
  }
  func.func @transform_2(%arg0: i32) -> (i32, i32) {
    %c0_i32 = arith.constant 0 : i32
    %c0_i32_0 = arith.constant 0 : i32
    return %arg0, %c0_i32 : i32, i32
  }
}

</mosaic_0001>

<bundles_post_ra>
// kernel: tpu_custom_call.1
= control target key start
LH: loop header
LB: loop body
LE: loop exit
PB: predicated region body
PF: predicated region fallthrough
CT: control target
= control target key end

     0   :  { %7 = vsyncpa [#allocation3], 0  ;;  %s322_s0 = inlined_call_operand.hbm [shape: f32[8,512], index: 0, kind: input, shape index: {}]   ;;  %s323_s1 = inlined_call_operand.hbm [shape: f32[8,512], index: 1, kind: input, shape index: {}]   ;;  %s324_s2 = inlined_call_operand.hbm [shape: f32[1,512], index: 2, kind: output, shape index: {}]  }
   0x1   :  { %8 = vsyncpa [#allocation6], 0 }
   0x2   :  { %9 = vsyncpa [#allocation4], 0  ;;  %s293_s9 = smov [#allocation2]   ;;  %s294_s11 = smov [#allocation5]  }
   0x3   :  { %s16_s10 = sshll.u32 %s293_s9, 4  ;;  %s26_s12 = sshll.u32 %s294_s11, 4  ;;  %s17_s10 = int_to_ptr.vmem [resolvable:$true] %s16_s10  ;;  %s27_s12 = int_to_ptr.vmem [resolvable:$true] %s26_s12 }
   0x4   :  { %s235_s13 = scalar_lea.vmem %s17_s10, 512  ;;  %p240_p1 = scmp.lt.s32.totalorder %s17_s10, %s17_s10 }
   0x5   :  { %p236_p0 = scmp.ne.s32.totalorder %s17_s10, %s235_s13  ;;  %p241_p2 = scmp.lt.s32.totalorder %s235_s13, %s235_s13 }
   0x7   :  { %p242_p3 = por %p241_p2, %p240_p1 }
   0x9   :  { %p243_p4 = pnand %p242_p3, %p236_p0 }
   0xb   :  { %246 = shalt.err (!%p243_p4)
}
   0xc   :  { %19 = dma.hbm_to_vmem [thread:$0]  %s322_s0, 512, %s17_s10, [#allocation3]  }
   0xd   :  { %s255_s16 = scalar_lea.vmem %s27_s12, 512  ;;  %p260_p6 = scmp.lt.s32.totalorder %s27_s12, %s27_s12 }
   0xe   :  { %p256_p5 = scmp.ne.s32.totalorder %s27_s12, %s255_s16  ;;  %p261_p7 = scmp.lt.s32.totalorder %s255_s16, %s255_s16 }
  0x10   :  { %p262_p8 = por %p261_p7, %p260_p6 }
  0x12   :  { %p263_p9 = pnand %p262_p8, %p256_p5 }
  0x14   :  { %266 = shalt.err (!%p263_p9)
}
  0x15   :  { %29 = dma.hbm_to_vmem [thread:$0]  %s323_s1, 512, %s27_s12, [#allocation6]  }
  0x16   :  { %287 = dma.done.wait [#allocation3], 512  }
  0x17   :  { %288 = vsyncadd [#allocation3], 4294966784 }
  0x18   :  { %289 = dma.done.wait [#allocation6], 512  }
  0x19   :  { %290 = vsyncadd [#allocation6], 4294966784  ;;  %v36_v0 = vld [vmem:[#allocation2] sm:$0xff]  ;;  %v37_v1 = vld [vmem:[#allocation2 + $0x8] sm:$0xff]  ;;  %v295_v11 = vmov 0.0   ;;  %s297_s0 = smov [#allocation7]  }
  0x1a   :  { %v38_v2 = vld [vmem:[#allocation2 + $0x10] sm:$0xff]  ;;  %v40_v3 = vld [vmem:[#allocation5] sm:$0xff]  ;;  %v41_v4 = vld [vmem:[#allocation5 + $0x8] sm:$0xff]  ;;  %v68_v5 = vsub.f32 1.0, %v36_v0  ;;  %v69_v6 = vsub.f32 1.0, %v37_v1  ;;  %s196_s1 = sshll.u32 %s297_s0, 4  ;;  %s197_s1 = int_to_ptr.vmem [resolvable:$true] %s196_s1 }
  0x1b   :  { %v70_v7 = vsub.f32 1.0, %v38_v2  ;;  %v42_v8 = vld [vmem:[#allocation5 + $0x10] sm:$0xff]  ;;  %v43_v9 = vld [vmem:[#allocation5 + $0x18] sm:$0xff]  ;;  %vm44_vm0 = vcmp.eq.f32.partialorder %v40_v3, 0.0  ;;  %vm45_vm1 = vcmp.eq.f32.partialorder %v41_v4, 0.0  ;;  %vm56_vm2 = vcmp.eq.f32.partialorder %v40_v3, 1.0  ;;  %p272_p11 = scmp.lt.s32.totalorder %s197_s1, %s197_s1 }
  0x1c   :  { %vm57_vm3 = vcmp.eq.f32.partialorder %v41_v4, 1.0  ;;  %v39_v10 = vld [vmem:[#allocation2 + $0x18] sm:$0xff]  ;;  %vm46_vm4 = vcmp.eq.f32.partialorder %v42_v8, 0.0  ;;  %vm47_vm5 = vcmp.eq.f32.partialorder %v43_v9, 0.0  ;;  %v206_v12 = vsel %vm44_vm0, 1.0, %v295_v11  ;;  %s267_s19 = scalar_lea.vmem %s197_s1, 64 }
  0x1d   :  { %v207_v13 = vsel %vm45_vm1, 1.0, %v295_v11  ;;  %v208_v14 = vsel %vm46_vm4, 1.0, %v295_v11  ;;  %v209_v15 = vsel %vm47_vm5, 1.0, %v295_v11  ;;  %vm58_vm6 = vcmp.eq.f32.partialorder %v42_v8, 1.0  ;;  %p268_p10 = scmp.ne.s32.totalorder %s197_s1, %s267_s19  ;;  %p273_p12 = scmp.lt.s32.totalorder %s267_s19, %s267_s19 }
  0x1e   :  { %vm59_vm7 = vcmp.eq.f32.partialorder %v43_v9, 1.0  ;;  %v210_v16 = vsel %vm56_vm2, 1.0, %v295_v11  ;;  %v211_v17 = vsel %vm57_vm3, 1.0, %v295_v11  ;;  %v212_v18 = vsel %vm58_vm6, 1.0, %v295_v11 }
  0x1f   :  { %v213_v19 = vsel %vm59_vm7, 1.0, %v295_v11  ;;  %v71_v20 = vsub.f32 1.0, %v39_v10  ;;  %v72_v21 = vmul.f32 %v206_v12, %v68_v5  ;;  %v73_v22 = vmul.f32 %v207_v13, %v69_v6  ;;  %p274_p13 = por %p273_p12, %p272_p11 }
  0x20   :  { %v74_v23 = vmul.f32 %v208_v14, %v70_v7  ;;  %v76_v24 = vmul.f32 %v210_v16, %v36_v0  ;;  %v77_v25 = vmul.f32 %v211_v17, %v37_v1  ;;  %v78_v26 = vmul.f32 %v212_v18, %v38_v2 }
  0x21   :  { %v79_v27 = vmul.f32 %v213_v19, %v39_v10  ;;  %v75_v28 = vmul.f32 %v209_v15, %v71_v20  ;;  %v100_v41 = vmul.f32 0.75, %v206_v12  ;;  %v104_v42 = vmul.f32 0.25, %v210_v16  ;;  %p275_p0 = pnand %p274_p13, %p268_p10 }
  0x22   :  { %v80_v29 = vadd.f32 %v76_v24, %v72_v21  ;;  %v81_v30 = vadd.f32 %v77_v25, %v73_v22  ;;  %v82_v31 = vadd.f32 %v78_v26, %v74_v23  ;;  %v101_v43 = vmul.f32 0.75, %v207_v13 }
  0x23   :  { %v83_v32 = vadd.f32 %v79_v27, %v75_v28  ;;  %v105_v44 = vmul.f32 0.25, %v211_v17  ;;  %v102_v45 = vmul.f32 0.75, %v208_v14  ;;  %v106_v46 = vmul.f32 0.25, %v212_v18 }
  0x24   :  { %v84_v33 = vmax.f32 %v80_v29, 0.0001  ;;  %v85_v34 = vmax.f32 %v81_v30, 0.0001  ;;  %v86_v35 = vmax.f32 %v82_v31, 0.0001  ;;  %v108_v49 = vadd.f32 %v104_v42, %v100_v41 }
  0x25   :  { %v87_v36 = vmax.f32 %v83_v32, 0.0001  ;;  %v103_v47 = vmul.f32 0.75, %v209_v15  ;;  %v107_v48 = vmul.f32 0.25, %v213_v19  ;;  %v109_v51 = vadd.f32 %v105_v44, %v101_v43 }
  0x26   :  { %v88_v37 = vmin.f32 %v84_v33, 1.0  ;;  %v89_v38 = vmin.f32 %v85_v34, 1.0  ;;  %v90_v39 = vmin.f32 %v86_v35, 1.0  ;;  %v110_v53 = vadd.f32 %v106_v46, %v102_v45 }
  0x27   :  { %v91_v40 = vmin.f32 %v87_v36, 1.0  ;;  %v111_v55 = vadd.f32 %v107_v48, %v103_v47  ;;  %v120_v58 = vsub.f32 0.0, %v108_v49  ;;  %v121_v60 = vsub.f32 0.0, %v109_v51 }
  0x28   :  { %219 = vlog2.f32 %v88_v37  ;;  %v112_v50 = vsub.f32 1.0, %v88_v37  ;;  %v113_v52 = vsub.f32 1.0, %v89_v38  ;;  %v114_v54 = vsub.f32 1.0, %v90_v39 }
  0x29   :  { %221 = vlog2.f32 %v89_v38  ;;  %v115_v56 = vsub.f32 1.0, %v91_v40  ;;  %v122_v62 = vsub.f32 0.0, %v110_v53  ;;  %v123_v0 = vsub.f32 0.0, %v111_v55 }
  0x2a   :  { %223 = vlog2.f32 %v90_v39  ;;  %v116_v57 = vmul.f32 %v112_v50, %v112_v50  ;;  %v117_v59 = vmul.f32 %v113_v52, %v113_v52  ;;  %v118_v61 = vmul.f32 %v114_v54, %v114_v54 }
  0x2b   :  { %225 = vlog2.f32 %v91_v40  ;;  %v119_v63 = vmul.f32 %v115_v56, %v115_v56  ;;  %v296_v23 = vmov 1966171168   ;;  %v165_v25 = vlaneseq }
  0x2c   :  { %v124_v1 = vmul.f32 %v120_v58, %v116_v57  ;;  %v125_v3 = vmul.f32 %v121_v60, %v117_v59  ;;  %v126_v6 = vmul.f32 %v122_v62, %v118_v61  ;;  %v163_v24 = vunpack.c.l.s4 %v296_v23 }
  0x2d   :  { %v127_v9 = vmul.f32 %v123_v0, %v119_v63  ;;  %v166_v35 = vshrl.u32 %v165_v25, 7  ;;  %vm187_vm8 = vcmp.lt.s32.totalorder %v165_v25, 512 }
  0x2e   :  { %v164_v34 = vunpack.c.0.s8 %v163_v24 }
  0x30   :  { %v167_v44 = vsub.s32 %v164_v34, %v166_v35 }
  0x35   :  { %v220_v2 = vpop.eup %219 }
  0x36   :  { %v222_v4 = vpop.eup %221  ;;  %v93_v5 = vmul.f32 0.6931472, %v220_v2 }
  0x37   :  { %v224_v7 = vpop.eup %223  ;;  %v95_v8 = vmul.f32 0.6931472, %v222_v4 }
  0x38   :  { %v226_v10 = vpop.eup %225  ;;  %v97_v11 = vmul.f32 0.6931472, %v224_v7  ;;  %v128_v12 = vmul.f32 %v124_v1, %v93_v5 }
  0x39   :  { %v99_v13 = vmul.f32 0.6931472, %v226_v10  ;;  %v129_v14 = vmul.f32 %v125_v3, %v95_v8 }
  0x3a   :  { %v130_v15 = vmul.f32 %v126_v6, %v97_v11  ;;  %v132_v16 = vrot.slane %v128_v12, 4 }
  0x3b   :  { %v131_v17 = vmul.f32 %v127_v9, %v99_v13  ;;  %v138_v18 = vrot.slane %v129_v14, 4 }
  0x3c   :  { %v133_v19 = vadd.f32 %v132_v16, %v128_v12  ;;  %v144_v20 = vrot.slane %v130_v15, 4 }
  0x3d   :  { %v139_v21 = vadd.f32 %v138_v18, %v129_v14  ;;  %v150_v22 = vrot.slane %v131_v17, 4 }
  0x3e   :  { %v134_v26 = vrot.slane %v133_v19, 2  ;;  %v145_v27 = vadd.f32 %v144_v20, %v130_v15 }
  0x3f   :  { %v140_v28 = vrot.slane %v139_v21, 2  ;;  %v151_v29 = vadd.f32 %v150_v22, %v131_v17 }
  0x40   :  { %v135_v30 = vadd.f32 %v134_v26, %v133_v19  ;;  %v146_v31 = vrot.slane %v145_v27, 2 }
  0x41   :  { %v141_v32 = vadd.f32 %v140_v28, %v139_v21  ;;  %v152_v33 = vrot.slane %v151_v29, 2 }
  0x42   :  { %v136_v36 = vrot.slane %v135_v30, 1  ;;  %v147_v37 = vadd.f32 %v146_v31, %v145_v27 }
  0x43   :  { %v142_v38 = vrot.slane %v141_v32, 1  ;;  %v153_v39 = vadd.f32 %v152_v33, %v151_v29 }
  0x44   :  { %v137_v40 = vadd.f32 %v136_v36, %v135_v30  ;;  %v148_v41 = vrot.slane %v147_v37, 1 }
  0x45   :  { %v143_v42 = vadd.f32 %v142_v38, %v141_v32  ;;  %v154_v43 = vrot.slane %v153_v39, 1 }
  0x46   :  { %v149_v45 = vadd.f32 %v148_v41, %v147_v37 }
  0x47   :  { %v155_v46 = vadd.f32 %v154_v43, %v153_v39  ;;  %v160_v47 = vcombine.low %v137_v40, %v143_v42 }
  0x49   :  { %v161_v48 = vcombine.low %v149_v45, %v155_v46  ;;  %v168_v49 = vrot.slane %v160_v47, %v167_v44 }
  0x4b   :  { %v175_v50 = vrot.slane %v161_v48, %v167_v44 }
  0x4d   :  { %v176_v51 = vcombine.low %v168_v49, %v175_v50 }
  0x4f   :  { %v183_v52 = vrot.slane %v176_v51, %v167_v44 }
  0x51   :  { %189 = vst.msk [vmem:[#allocation7] sm:$0xf] %vm187_vm8, %v183_v52 }
  0x52   :  { %278 = shalt.err (!%p275_p0)
}
  0x53   :  { %199 = dma.vmem_to_hbm [thread:$0]  %s197_s1, 64, %s324_s2, [#allocation4]  }
  0x54   :  { %291 = dma.done.wait [#allocation4], 64  }
  0x55   :  { %292 = vsyncadd [#allocation4], 4294967232 }
  0x56   :  { %203 = vsyncpa [#allocation3], 1 }
  0x57   :  { %204 = vsyncpa [#allocation6], 1 }
  0x58   :  { %205 = vsyncpa [#allocation4], 1 }

</bundles_post_ra>
